<compile_context>
chip_gen: v5e
topology: v5e:2x2
jax: 0.10.0
libtpu: 0.0.40
codegen_flags: <defaults>
</compile_context>

<pallas_src>
import functools

import jax
import jax.numpy as jnp
from jax import lax
from jax.experimental import pallas as pl
from jax.experimental.pallas import tpu as pltpu


def _round_up(x, m):
    return (x + m - 1) // m * m


def _vmem_footprint_bytes(shape, dtype):
    """VMEM bytes of an array, counting lane(128)/sublane padding."""
    itemsize = jnp.dtype(dtype).itemsize
    sublane = {1: 32, 2: 16, 4: 8}.get(itemsize, 8)
    dims = list(shape)
    if len(dims) >= 1:
        dims[-1] = _round_up(dims[-1], 128)
    if len(dims) >= 2:
        dims[-2] = _round_up(dims[-2], sublane)
    n = 1
    for d in dims:
        n *= d
    return n * itemsize


def _mlp_kernel(dims, output_dim, n_hidden_stack, x_ref, *refs):
    """Fused MLP forward for one batch tile, transposed (feature, batch) layout.

    x_ref:  (input_dim, TB) in the matmul dtype (bf16 or f32).
    refs:   w_first (width, input_dim), [w_hidden (n_hidden, width, width)],
            w_last (2*output_dim, width), b_packed (max_fan_out, n_lin) f32,
            out_ref (2*output_dim, TB) f32.
    dims = (input_dim, width, ..., width, 2*output_dim); n_lin = len(dims)-1.
    """
    idx = 0
    w_first_ref = refs[idx]; idx += 1
    w_hidden_ref = None
    if n_hidden_stack > 0:
        w_hidden_ref = refs[idx]; idx += 1
    w_last_ref = refs[idx]; idx += 1
    b_ref = refs[idx]; idx += 1
    out_ref = refs[idx]

    n_lin = len(dims) - 1
    h = x_ref[...]                               # (input_dim, TB), matmul dtype

    for i in range(n_lin):                       # static unroll; depth is small
        fan_out = dims[i + 1]
        if i == 0:
            w = w_first_ref[...]
        elif i == n_lin - 1:
            w = w_last_ref[...]
        else:
            w = w_hidden_ref[i - 1]              # static index into stacked weights
        b = b_ref[0:fan_out, i:i + 1]            # (fan_out, 1) f32 bias column
        # (fan_out, fan_in) @ (fan_in, TB) -> (fan_out, TB), f32 accumulation.
        h = jnp.dot(w, h, preferred_element_type=jnp.float32) + b
        if i < n_lin - 1:
            h = jnp.maximum(h, 0.0)              # ReLU in f32 on the VPU
            # TODO(synk): training-mode / MC-dropout (pltpu.prng_*) not wired
            # in; nn.Dropout(p=0.5) is the eval-mode identity here.
            h = h.astype(w.dtype)                # back to matmul dtype for next layer

    # h: (2*output_dim, TB) f32.  Softplus only on the sigma rows (sublane
    # slice); mu rows stored untouched.  PyTorch softplus guard (threshold=20).
    s = h[output_dim:, :]
    sp = jnp.where(s > 20.0, s, jnp.log1p(jnp.exp(jnp.minimum(s, 20.0))))
    out_ref[0:output_dim, :] = h[0:output_dim, :]     # lane-dense stores (TB lanes)
    out_ref[output_dim:, :] = sp


def mlp_drop_gauss_forward(x, params, *, input_dim, width, depth, output_dim,
                           flatten_image, block_batch=8192,
                           weight_dtype=jnp.bfloat16):
    """Wrapper: flatten, transpose to lane-dense layout, pack params, tile batch."""
    if flatten_image:
        x = x.reshape(-1, input_dim)
    x = x.astype(jnp.float32)
    B = x.shape[0]

    dims = (input_dim,) + (width,) * depth + (2 * output_dim,)
    n_lin = depth + 1
    assert len(params) == n_lin

    # ---- pack parameters (transposed to (fan_out, fan_in); few large operands)
    w_first = jnp.transpose(params[0][0]).astype(weight_dtype)    # (width, input_dim)
    w_last = jnp.transpose(params[-1][0]).astype(weight_dtype)    # (2*out, width)
    hidden_ws = [jnp.transpose(w).astype(weight_dtype) for (w, _) in params[1:-1]]
    n_hidden = len(hidden_ws)                                     # == depth - 1
    max_fan_out = max(dims[1:])
    b_cols = []
    for (_, b) in params:
        b1d = jnp.reshape(b, (-1,)).astype(jnp.float32)
        b_cols.append(jnp.pad(b1d, (0, max_fan_out - b1d.shape[0])))
    b_packed = jnp.stack(b_cols, axis=1)                          # (max_fan_out, n_lin)

    # ---- parameter VMEM footprint (lane/sublane padded) ---------------------
    param_shapes = [(w_first.shape, weight_dtype)]
    if n_hidden > 0:
        param_shapes.append(((n_hidden, width, width), weight_dtype))
    param_shapes += [(w_last.shape, weight_dtype), (b_packed.shape, jnp.float32)]
    param_vmem = sum(_vmem_footprint_bytes(s, d) for s, d in param_shapes)

    try:
        info = pltpu.get_tpu_info()
        phys_vmem = int(getattr(info, "vmem_capacity_bytes", 64 << 20))
    except Exception:
        phys_vmem = 64 << 20                     # conservative (v7x)
    vmem_cap = max(int(phys_vmem * 3 // 4), 32 << 20)   # ~48 MiB v7x, ~96 MiB v5e/v6e

    def _tile_vmem(tb):
        xb = _vmem_footprint_bytes((input_dim, tb), weight_dtype)
        ob = _vmem_footprint_bytes((2 * output_dim, tb), jnp.float32)
        act = 4 * _vmem_footprint_bytes((max(dims), tb), jnp.float32)   # live temps
        return 2 * (xb + ob) + 2 * param_vmem + act

    # ---- batch tiling: batch on lanes -> TB multiple of 128, large tiles ----
    TB = _round_up(min(int(block_batch), max(B, 1)), 128)
    while TB > 128 and _tile_vmem(TB) > vmem_cap:
        TB = _round_up(TB // 2, 128)
    B_pad = _round_up(max(B, 1), TB)
    # v7x: keep >= 2 parallel grid steps when there is enough batch to split.
    if B_pad // TB < 2 and B_pad >= 2 * 128:
        TB = _round_up(pl.cdiv(B_pad, 2), 128)
        B_pad = _round_up(max(B, 1), TB)
    grid = (B_pad // TB,)

    # ---- transposed, lane-dense input: (input_dim, B_pad) in matmul dtype ---
    xT = jnp.transpose(x).astype(weight_dtype)
    if B_pad != B:
        xT = jnp.pad(xT, ((0, 0), (0, B_pad - B)))

    operands = [xT, w_first]
    in_specs = [pl.BlockSpec((input_dim, TB), lambda i: (0, i)),
                pl.BlockSpec((width, input_dim), lambda i: (0, 0))]
    if n_hidden > 0:
        operands.append(jnp.stack(hidden_ws))                     # (n_hidden, w, w)
        in_specs.append(pl.BlockSpec((n_hidden, width, width), lambda i: (0, 0, 0)))
    operands += [w_last, b_packed]
    in_specs += [pl.BlockSpec((2 * output_dim, width), lambda i: (0, 0)),
                 pl.BlockSpec((max_fan_out, n_lin), lambda i: (0, 0))]
    out_specs = pl.BlockSpec((2 * output_dim, TB), lambda i: (0, i))
    out_shape = jax.ShapeDtypeStruct((2 * output_dim, B_pad), jnp.float32)

    # ---- cost estimate + explicit VMEM budget --------------------------------
    mm_itemsize = jnp.dtype(weight_dtype).itemsize
    flops = int(2 * B_pad * sum(dims[i] * dims[i + 1] for i in range(n_lin)))
    transcendentals = int(2 * B_pad * output_dim)        # exp + log1p, sigma rows only
    logical_param_bytes = sum(int(op.size) * int(op.dtype.itemsize)
                              for op in operands[1:])
    bytes_accessed = int(B_pad * input_dim * mm_itemsize + logical_param_bytes
                         + B_pad * 2 * output_dim * 4)
    cost = pl.CostEstimate(flops=flops, transcendentals=transcendentals,
                           bytes_accessed=bytes_accessed)

    vmem_limit = int(min(max(3 * _tile_vmem(TB) // 2, 32 << 20), vmem_cap))

    kernel = functools.partial(_mlp_kernel, dims, output_dim, n_hidden)

    out = pl.pallas_call(
        kernel,
        out_shape=out_shape,
        grid_spec=pltpu.PrefetchScalarGridSpec(
            num_scalar_prefetch=0,
            grid=grid,
            in_specs=in_specs,
            out_specs=out_specs,
        ),
        compiler_params=pltpu.CompilerParams(
            dimension_semantics=("parallel",),
            vmem_limit_bytes=vmem_limit,
        ),
        cost_estimate=cost,
    )(*operands)

    mu = jnp.transpose(out[:output_dim, :B])             # (B, output_dim)
    sigma = jnp.transpose(out[output_dim:, :B])          # (B, output_dim)
    return mu, sigma


def init_params(key, input_dim, width, depth, output_dim):
    """Deterministic PyTorch-nn.Linear-style init: U(-1/sqrt(fan_in), 1/sqrt(fan_in))."""
    dims = [input_dim] + [width] * depth + [2 * output_dim]
    params = []
    for i in range(len(dims) - 1):
        fan_in, fan_out = dims[i], dims[i + 1]
        bound = 1.0 / jnp.sqrt(jnp.float32(fan_in))
        key, kw, kb = jax.random.split(key, 3)
        w = jax.random.uniform(kw, (fan_in, fan_out), jnp.float32, -bound, bound)
        b = jax.random.uniform(kb, (1, fan_out), jnp.float32, -bound, bound)
        params.append((w, b))
    return params


def _reference(x, params, input_dim, output_dim, flatten_image,
               weight_dtype=jnp.float32):
    """Pure-JAX reference mirroring the kernel's dtype handling."""
    if flatten_image:
        x = x.reshape(-1, input_dim)
    h = x.astype(jnp.float32)
    n = len(params)
    for i, (w, b) in enumerate(params):
        w = w.astype(weight_dtype)
        h = jnp.dot(h.astype(weight_dtype), w,
                    preferred_element_type=jnp.float32) + b.astype(jnp.float32)
        if i < n - 1:
            h = jnp.maximum(h, 0.0)
    mu = h[:, :output_dim]
    s = h[:, output_dim:]
    sigma = jnp.where(s > 20.0, s, jnp.log1p(jnp.exp(jnp.minimum(s, 20.0))))
    return mu, sigma


if __name__ == "__main__":
    # Config consistent with MLP_drop_gauss(input_dim=32, width=64, depth=3,
    # output_dim=8, flatten_image=True).
    input_dim, width, depth, output_dim = 32, 64, 3, 8
    flatten_image = True

    key = jax.random.PRNGKey(0)
    key, kx = jax.random.split(key)
    x = jax.random.normal(kx, (20, 2, 4, 4), dtype=jnp.float32)   # flattens to [20, 32]

    params = init_params(key, input_dim, width, depth, output_dim)

    # Run 1: f32 matmul operands; tiny batch is padded up to one 128-lane tile.
    mu, sigma = mlp_drop_gauss_forward(
        x, params, input_dim=input_dim, width=width, depth=depth,
        output_dim=output_dim, flatten_image=flatten_image,
        weight_dtype=jnp.float32)
    jax.block_until_ready((mu, sigma))

    mu_ref, sigma_ref = _reference(x, params, input_dim, output_dim, flatten_image,
                                   weight_dtype=jnp.float32)
    assert mu.shape == (20, output_dim) and sigma.shape == (20, output_dim)
    assert jnp.allclose(mu, mu_ref, atol=5e-5, rtol=5e-5)
    assert jnp.allclose(sigma, sigma_ref, atol=5e-5, rtol=5e-5)
    assert bool(jnp.all(sigma >= 0.0))

    # Run 2: default bf16 matmul operands (f32 accumulation), bigger batch with
    # block_batch=128 so the grid really has several parallel steps (exercises
    # batch tiling + ragged-tile zero-padding).
    key, kx2 = jax.random.split(key)
    x2 = jax.random.normal(kx2, (300, input_dim), dtype=jnp.float32)
    mu2, sigma2 = mlp_drop_gauss_forward(
        x2, params, input_dim=input_dim, width=width, depth=depth,
        output_dim=output_dim, flatten_image=flatten_image, block_batch=128)
    jax.block_until_ready((mu2, sigma2))

    mu2_ref, sigma2_ref = _reference(x2, params, input_dim, output_dim,
                                     flatten_image, weight_dtype=jnp.bfloat16)
    assert mu2.shape == (300, output_dim) and sigma2.shape == (300, output_dim)
    assert jnp.allclose(mu2, mu2_ref, atol=2e-3, rtol=2e-3)
    assert jnp.allclose(sigma2, sigma2_ref, atol=2e-3, rtol=2e-3)
    assert bool(jnp.all(sigma2 >= 0.0))

    print("KERNEL_OK")
</pallas_src>

<mosaic_0001>
module attributes {stable_mosaic.version = 11 : i64} {
  func.func @_mlp_kernel(%arg0: i32, %arg1: memref<32x128xf32, #tpu.memory_space<vmem>>, %arg2: memref<64x32xf32, #tpu.memory_space<vmem>>, %arg3: memref<2x64x64xf32, #tpu.memory_space<vmem>>, %arg4: memref<16x64xf32, #tpu.memory_space<vmem>>, %arg5: memref<64x4xf32, #tpu.memory_space<vmem>>, %arg6: memref<16x128xf32, #tpu.memory_space<vmem>>) attributes {dimension_semantics = [#tpu.dimension_semantics<parallel>], iteration_bounds = array<i64: 1>, scalar_prefetch = 0 : i64, scratch_operands = 0 : i64, tpu.core_type = #tpu.core_type<tc>, window_params = [{transform_indices = @transform_0, window_bounds = array<i64: 32, 128>}, {pipeline_mode = #tpu.pipeline_mode<synchronous>, transform_indices = @transform_1, window_bounds = array<i64: 64, 32>}, {pipeline_mode = #tpu.pipeline_mode<synchronous>, transform_indices = @transform_2, window_bounds = array<i64: 2, 64, 64>}, {pipeline_mode = #tpu.pipeline_mode<synchronous>, transform_indices = @transform_3, window_bounds = array<i64: 16, 64>}, {pipeline_mode = #tpu.pipeline_mode<synchronous>, transform_indices = @transform_4, window_bounds = array<i64: 64, 4>}, {transform_indices = @transform_5, window_bounds = array<i64: 16, 128>}]} {
    %c0 = arith.constant 0 : index
    %c0_0 = arith.constant 0 : index
    %0 = vector.load %arg1[%c0, %c0_0] : memref<32x128xf32, #tpu.memory_space<vmem>>, vector<32x128xf32>
    %c0_1 = arith.constant 0 : index
    %c0_2 = arith.constant 0 : index
    %1 = vector.load %arg2[%c0_1, %c0_2] : memref<64x32xf32, #tpu.memory_space<vmem>>, vector<64x32xf32>
    %c0_3 = arith.constant 0 : index
    %c0_4 = arith.constant 0 : index
    %2 = vector.load %arg5[%c0_3, %c0_4] : memref<64x4xf32, #tpu.memory_space<vmem>>, vector<64x1xf32>
    %cst = arith.constant dense<0.000000e+00> : vector<64x128xf32>
    %3 = tpu.matmul %1, %0, %cst {dimension_numbers = #tpu.dot_dimension_numbers<[1], [0], [0], [1], [0, 0, 1, 1], [], []>} : vector<64x32xf32>, vector<32x128xf32>, vector<64x128xf32> -> vector<64x128xf32>
    %4 = vector.broadcast %2 : vector<64x1xf32> to vector<64x128xf32>
    %5 = arith.addf %3, %4 : vector<64x128xf32>
    %cst_5 = arith.constant 0.000000e+00 : f32
    %6 = vector.broadcast %cst_5 : f32 to vector<64x128xf32>
    %7 = arith.maximumf %5, %6 : vector<64x128xf32>
    %c0_6 = arith.constant 0 : index
    %c0_7 = arith.constant 0 : index
    %c0_8 = arith.constant 0 : index
    %8 = vector.load %arg3[%c0_6, %c0_7, %c0_8] : memref<2x64x64xf32, #tpu.memory_space<vmem>>, vector<1x64x64xf32>
    %9 = vector.shape_cast %8 : vector<1x64x64xf32> to vector<64x64xf32>
    %c0_9 = arith.constant 0 : index
    %c1 = arith.constant 1 : index
    %10 = vector.load %arg5[%c0_9, %c1] : memref<64x4xf32, #tpu.memory_space<vmem>>, vector<64x1xf32>
    %cst_10 = arith.constant dense<0.000000e+00> : vector<64x128xf32>
    %11 = tpu.matmul %9, %7, %cst_10 {dimension_numbers = #tpu.dot_dimension_numbers<[1], [0], [0], [1], [0, 0, 1, 1], [], []>} : vector<64x64xf32>, vector<64x128xf32>, vector<64x128xf32> -> vector<64x128xf32>
    %12 = vector.broadcast %10 : vector<64x1xf32> to vector<64x128xf32>
    %13 = arith.addf %11, %12 : vector<64x128xf32>
    %cst_11 = arith.constant 0.000000e+00 : f32
    %14 = vector.broadcast %cst_11 : f32 to vector<64x128xf32>
    %15 = arith.maximumf %13, %14 : vector<64x128xf32>
    %c1_12 = arith.constant 1 : index
    %c0_13 = arith.constant 0 : index
    %c0_14 = arith.constant 0 : index
    %16 = vector.load %arg3[%c1_12, %c0_13, %c0_14] : memref<2x64x64xf32, #tpu.memory_space<vmem>>, vector<1x64x64xf32>
    %17 = vector.shape_cast %16 : vector<1x64x64xf32> to vector<64x64xf32>
    %c0_15 = arith.constant 0 : index
    %c2 = arith.constant 2 : index
    %18 = vector.load %arg5[%c0_15, %c2] : memref<64x4xf32, #tpu.memory_space<vmem>>, vector<64x1xf32>
    %cst_16 = arith.constant dense<0.000000e+00> : vector<64x128xf32>
    %19 = tpu.matmul %17, %15, %cst_16 {dimension_numbers = #tpu.dot_dimension_numbers<[1], [0], [0], [1], [0, 0, 1, 1], [], []>} : vector<64x64xf32>, vector<64x128xf32>, vector<64x128xf32> -> vector<64x128xf32>
    %20 = vector.broadcast %18 : vector<64x1xf32> to vector<64x128xf32>
    %21 = arith.addf %19, %20 : vector<64x128xf32>
    %cst_17 = arith.constant 0.000000e+00 : f32
    %22 = vector.broadcast %cst_17 : f32 to vector<64x128xf32>
    %23 = arith.maximumf %21, %22 : vector<64x128xf32>
    %c0_18 = arith.constant 0 : index
    %c0_19 = arith.constant 0 : index
    %24 = vector.load %arg4[%c0_18, %c0_19] : memref<16x64xf32, #tpu.memory_space<vmem>>, vector<16x64xf32>
    %c0_20 = arith.constant 0 : index
    %c3 = arith.constant 3 : index
    %25 = vector.load %arg5[%c0_20, %c3] : memref<64x4xf32, #tpu.memory_space<vmem>>, vector<16x1xf32>
    %cst_21 = arith.constant dense<0.000000e+00> : vector<16x128xf32>
    %26 = tpu.matmul %24, %23, %cst_21 {dimension_numbers = #tpu.dot_dimension_numbers<[1], [0], [0], [1], [0, 0, 1, 1], [], []>} : vector<16x64xf32>, vector<64x128xf32>, vector<16x128xf32> -> vector<16x128xf32>
    %27 = vector.broadcast %25 : vector<16x1xf32> to vector<16x128xf32>
    %28 = arith.addf %26, %27 : vector<16x128xf32>
    %29 = vector.extract_strided_slice %28 {offsets = [8, 0], sizes = [8, 128], strides = [1, 1]} : vector<16x128xf32> to vector<8x128xf32>
    %cst_22 = arith.constant 2.000000e+01 : f32
    %30 = vector.broadcast %cst_22 : f32 to vector<8x128xf32>
    %31 = arith.cmpf ogt, %29, %30 : vector<8x128xf32>
    %cst_23 = arith.constant 2.000000e+01 : f32
    %32 = vector.broadcast %cst_23 : f32 to vector<8x128xf32>
    %33 = arith.minimumf %29, %32 : vector<8x128xf32>
    %34 = math.exp %33 : vector<8x128xf32>
    %35 = math.log1p %34 : vector<8x128xf32>
    %36 = arith.select %31, %29, %35 : vector<8x128xi1>, vector<8x128xf32>
    %37 = vector.extract_strided_slice %28 {offsets = [0, 0], sizes = [8, 128], strides = [1, 1]} : vector<16x128xf32> to vector<8x128xf32>
    %c0_24 = arith.constant 0 : index
    %c0_25 = arith.constant 0 : index
    %38 = vector.load %arg6[%c0_24, %c0_25] : memref<16x128xf32, #tpu.memory_space<vmem>>, vector<8x128xf32>
    tpu.vector_store %arg6[%c0_24, %c0_25], %37 {strides = array<i32>} : memref<16x128xf32, #tpu.memory_space<vmem>>, vector<8x128xf32>,
    %c8 = arith.constant 8 : index
    %c0_26 = arith.constant 0 : index
    %39 = vector.load %arg6[%c8, %c0_26] : memref<16x128xf32, #tpu.memory_space<vmem>>, vector<8x128xf32>
    tpu.vector_store %arg6[%c8, %c0_26], %36 {strides = array<i32>} : memref<16x128xf32, #tpu.memory_space<vmem>>, vector<8x128xf32>,
    return
  }
  func.func @transform_0(%arg0: i32) -> (i32, i32) {
    %c0_i32 = arith.constant 0 : i32
    %c0_i32_0 = arith.constant 0 : i32
    return %c0_i32, %arg0 : i32, i32
  }
  func.func @transform_1(%arg0: i32) -> (i32, i32) {
    %c0_i32 = arith.constant 0 : i32
    %c0_i32_0 = arith.constant 0 : i32
    %c0_i32_1 = arith.constant 0 : i32
    return %c0_i32, %c0_i32_0 : i32, i32
  }
  func.func @transform_2(%arg0: i32) -> (i32, i32, i32) {
    %c0_i32 = arith.constant 0 : i32
    %c0_i32_0 = arith.constant 0 : i32
    %c0_i32_1 = arith.constant 0 : i32
    %c0_i32_2 = arith.constant 0 : i32
    return %c0_i32, %c0_i32_0, %c0_i32_1 : i32, i32, i32
  }
  func.func @transform_3(%arg0: i32) -> (i32, i32) {
    %c0_i32 = arith.constant 0 : i32
    %c0_i32_0 = arith.constant 0 : i32
    %c0_i32_1 = arith.constant 0 : i32
    return %c0_i32, %c0_i32_0 : i32, i32
  }
  func.func @transform_4(%arg0: i32) -> (i32, i32) {
    %c0_i32 = arith.constant 0 : i32
    %c0_i32_0 = arith.constant 0 : i32
    %c0_i32_1 = arith.constant 0 : i32
    return %c0_i32, %c0_i32_0 : i32, i32
  }
  func.func @transform_5(%arg0: i32) -> (i32, i32) {
    %c0_i32 = arith.constant 0 : i32
    %c0_i32_0 = arith.constant 0 : i32
    return %c0_i32, %arg0 : i32, i32
  }
}

</mosaic_0001>

<bundles_post_ra>
// kernel: tpu_custom_call.1
= control target key start
LH: loop header
LB: loop body
LE: loop exit
PB: predicated region body
PF: predicated region fallthrough
CT: control target
= control target key end

     0   :  { %10 = vsyncpa [#allocation3], 0  ;;  %s812_s0 = inlined_call_operand.vmem [shape: f32[32,128], index: 0, kind: input, shape index: {}]   ;;  %s813_s1 = inlined_call_operand.vmem [shape: f32[64,32], index: 1, kind: input, shape index: {}]   ;;  %s814_s2 = inlined_call_operand.vmem [shape: f32[2,64,64], index: 2, kind: input, shape index: {}]   ;;  %s815_s3 = inlined_call_operand.hbm [shape: f32[16,64], index: 3, kind: input, shape index: {}]   ;;  %s816_s4 = inlined_call_operand.vmem [shape: f32[64,4], index: 4, kind: input, shape index: {}]   ;;  %s817_s5 = inlined_call_operand.hbm [shape: f32[16,128], index: 5, kind: output, shape index: {}]  }
   0x1   :  { %11 = vsyncpa [#allocation4], 0  ;;  %s22_s20 = sshll.u32 %s815_s3, 4  ;;  %s586_s21 = smov [#allocation2]   ;;  %s23_s20 = int_to_ptr.hbm [resolvable:$true] %s22_s20 }
   0x2   :  { %s24_s22 = sshll.u32 %s586_s21, 4  ;;  %s587_s23 = smov 128   ;;  %s25_s22 = int_to_ptr.vmem [resolvable:$true] %s24_s22 }
   0x3   :  { %s588_s24 = smov 8  }
   0x4   :  { %30 = dma.hbm_to_vmem [thread:$0]  %s23_s20, 256, %s25_s22, [#allocation3], %s587_s23, %s587_s23, %s588_s24  }
   0x5   :  { %582 = dma.done.wait [#allocation3], 256  }
   0x6   :  { %583 = vsyncadd [#allocation3], 4294967040  ;;  %v589_v0 = vmov 0   ;;  %v40_v1 = vld [vmem:[%s812_s0 + $0x18] sm:$0xff]  ;;  %v636_v2 = vld [vmem:[%s816_s4 + $0x28] sm:$0xff]  ;;  %vm97_vm0 = vcmask 261120  }
   0x7   :  { %520 = vset.pattern.permute.xlu1 %v589_v0  ;;  %519 = vset.pattern.permute.xlu0 %v589_v0  ;;  %v39_v3 = vld [vmem:[%s812_s0 + $0x10] sm:$0xff]  ;;  %v38_v4 = vld [vmem:[%s812_s0 + $0x8] sm:$0xff]  ;;  %v648_v5 = vld [vmem:[%s816_s4 + $0x38] sm:$0xff]  ;;  %v590_v26 = vmov 1   ;;  %vm211_vm1 = vcmask 523264   ;;  %s464_s19 = sshll.u32 %s817_s5, 4  ;;  %s465_s19 = int_to_ptr.hbm [resolvable:$true] %s464_s19 }
   0x8   :  { %521 = vset.pattern.permute.xlu2 %v589_v0  ;;  %134 = vmatpush.msra.mxu0 %v40_v1  ;;  %v37_v6 = vld [vmem:[%s812_s0] sm:$0xff]  ;;  %v666_v9 = vld [vmem:[%s816_s4 + $0x30] sm:$0xff]  ;;  %v42_v10 = vld [vmem:[%s813_s1 + $0x8] sm:$0xff] }
   0x9   :  { %84 = vperm.xlu1 %520, %v636_v2   ;;  %94 = vperm.xlu0 %519, %v648_v5   ;;  %v41_v7 = vld [vmem:[%s813_s1] sm:$0xff]  ;;  %v682_v12 = vld [vmem:[%s816_s4 + $0x8] sm:$0xff]  ;;  %v687_v13 = vld [vmem:[%s816_s4 + $0x18] sm:$0xff] }
   0xa   :  { %135 = vmatpush.msra.mxu0 %v39_v3  ;;  %v660_v8 = vld [vmem:[%s816_s4 + $0x20] sm:$0xff]  ;;  %74 = vperm.xlu2 %521, %v687_v13   ;;  %v43_v14 = vld [vmem:[%s813_s1 + $0x10] sm:$0xff]  ;;  %v44_v16 = vld [vmem:[%s813_s1 + $0x18] sm:$0xff] }
   0xb   :  { %v676_v11 = vld [vmem:[%s816_s4] sm:$0xff]  ;;  %v699_v15 = vld [vmem:[%s816_s4 + $0x10] sm:$0xff]  ;;  %v46_v18 = vld [vmem:[%s813_s1 + $0x28] sm:$0xff] }
   0xc   :  { %136 = vmatpush.msra.mxu0 %v38_v4  ;;  %v45_v17 = vld [vmem:[%s813_s1 + $0x20] sm:$0xff]  ;;  %v47_v19 = vld [vmem:[%s813_s1 + $0x30] sm:$0xff]  ;;  %v48_v20 = vld [vmem:[%s813_s1 + $0x38] sm:$0xff] }
   0xd   :  { %v171_v54 = vld [vmem:[%s814_s2] sm:$0xff]  ;;  %v172_v55 = vld [vmem:[%s814_s2 + $0x8] sm:$0xff]  ;;  %v173_v56 = vld [vmem:[%s814_s2 + $0x10] sm:$0xff] }
   0xe   :  { %137 = vmatpush.msra.mxu0 %v37_v6  ;;  %v174_v57 = vld [vmem:[%s814_s2 + $0x18] sm:$0xff]  ;;  %v175_v58 = vld [vmem:[%s814_s2 + $0x20] sm:$0xff]  ;;  %v176_v59 = vld [vmem:[%s814_s2 + $0x28] sm:$0xff] }
   0xf   :  { %477 = vmatmul.msk.f32.vlgmr.msra.gmra.mxu0 %vm97_vm0, %v41_v7  ;;  %v177_v60 = vld [vmem:[%s814_s2 + $0x30] sm:$0xff]  ;;  %v178_v61 = vld [vmem:[%s814_s2 + $0x38] sm:$0xff]  ;;  %v591_v7 = vmov 2  }
  0x11   :  { %79 = vperm.xlu1 %520, %v660_v8   ;;  %89 = vperm.xlu0 %519, %v666_v9  }
  0x12   :  { %69 = vperm.xlu2 %521, %v699_v15  }
  0x17   :  { %478 = vmatmul.msk.f32.gmra.mxu0 %vm97_vm0, %v42_v10 }
  0x19   :  { %59 = vperm.xlu1 %520, %v676_v11   ;;  %64 = vperm.xlu0 %519, %v682_v12  }
  0x1a   :  { %522 = vset.pattern.permute.xlu2 %v590_v26 }
  0x1b   :  { %208 = vperm.xlu2 %522, %v648_v5  }
  0x1f   :  { %479 = vmatmul.msk.f32.gmra.mxu0 %vm97_vm0, %v43_v14 }
  0x21   :  { %524 = vset.pattern.permute.xlu1 %v590_v26  ;;  %523 = vset.pattern.permute.xlu0 %v590_v26 }
  0x22   :  { %200 = vperm.xlu1 %524, %v636_v2   ;;  %204 = vperm.xlu0 %523, %v666_v9  }
  0x23   :  { %196 = vperm.xlu2 %522, %v660_v8  }
  0x27   :  { %480 = vmatmul.msk.f32.gmra.mxu0 %vm97_vm0, %v44_v16 }
  0x2a   :  { %192 = vperm.xlu1 %524, %v687_v13   ;;  %184 = vperm.xlu0 %523, %v682_v12  }
  0x2b   :  { %188 = vperm.xlu2 %522, %v699_v15  }
  0x2f   :  { %481 = vmatmul.msk.f32.gmra.mxu0 %vm97_vm0, %v45_v17 }
  0x32   :  { %180 = vperm.xlu1 %524, %v676_v11   ;;  %526 = vset.pattern.permute.xlu0 %v591_v7 }
  0x33   :  { %319 = vperm.xlu0 %526, %v666_v9   ;;  %525 = vset.pattern.permute.xlu2 %v591_v7 }
  0x34   :  { %323 = vperm.xlu2 %525, %v648_v5  }
  0x37   :  { %482 = vmatmul.msk.f32.gmra.mxu0 %vm97_vm0, %v46_v18 }
  0x3a   :  { %527 = vset.pattern.permute.xlu1 %v591_v7 }
  0x3b   :  { %315 = vperm.xlu1 %527, %v636_v2   ;;  %299 = vperm.xlu0 %526, %v682_v12  }
  0x3c   :  { %311 = vperm.xlu2 %525, %v660_v8  }
  0x3f   :  { %483 = vmatmul.msk.f32.gmra.mxu0 %vm97_vm0, %v47_v19 }
  0x43   :  { %307 = vperm.xlu1 %527, %v687_v13  }
  0x44   :  { %303 = vperm.xlu2 %525, %v699_v15   ;;  %v494_v15 = vld [vmem:[%s814_s2 + $0x48] sm:$0xff] }
  0x47   :  { %484 = vmatmul.msk.f32.gmra.mxu0 %vm97_vm0, %v48_v20 }
  0x4b   :  { %295 = vperm.xlu1 %527, %v676_v11  }
  0x64   :  { %v75_v31 = vpop.permute.xlu2 %74 }
  0x6c   :  { %v70_v41 = vpop.permute.xlu2 %69 }
  0x75   :  { %v209_v6 = vpop.permute.xlu2 %208 }
  0x7b   :  { %v95_v28 = vpop.permute.xlu0 %94  ;;  %v85_v29 = vpop.permute.xlu1 %84 }
  0x7d   :  { %v197_v16 = vpop.permute.xlu2 %196 }
  0x83   :  { %v90_v32 = vpop.permute.xlu0 %89  ;;  %v80_v33 = vpop.permute.xlu1 %79 }
  0x85   :  { %v189_v5 = vpop.permute.xlu2 %188 }
  0x8b   :  { %v65_v44 = vpop.permute.xlu0 %64  ;;  %v60_v47 = vpop.permute.xlu1 %59 }
  0x8c   :  { %v139_v21 = vpop.f32.mrf.mxu0 }
  0x8d   :  { %v140_v50 = vadd.f32 %v139_v21, %v60_v47 }
  0x8e   :  { %v324_v47 = vpop.permute.xlu2 %323 }
  0x8f   :  { %v163_v53 = vmax.f32 %v140_v50, 0.0 }
  0x94   :  { %v142_v22 = vpop.f32.mrf.mxu0  ;;  %v201_v10 = vpop.permute.xlu1 %200 }
  0x95   :  { %v143_v48 = vadd.f32 %v142_v22, %v65_v44  ;;  %v205_v17 = vpop.permute.xlu0 %204 }
  0x96   :  { %v312_v50 = vpop.permute.xlu2 %311 }
  0x97   :  { %v164_v52 = vmax.f32 %v143_v48, 0.0 }
  0x9c   :  { %v145_v23 = vpop.f32.mrf.mxu0  ;;  %v193_v18 = vpop.permute.xlu1 %192 }
  0x9d   :  { %v146_v45 = vadd.f32 %v145_v23, %v70_v41  ;;  %v185_v13 = vpop.permute.xlu0 %184 }
  0x9f   :  { %v165_v51 = vmax.f32 %v146_v45, 0.0 }
  0xa4   :  { %v148_v24 = vpop.f32.mrf.mxu0 }
  0xa5   :  { %v149_v42 = vadd.f32 %v148_v24, %v75_v31 }
  0xa7   :  { %v166_v49 = vmax.f32 %v149_v42, 0.0 }
  0xac   :  { %v151_v25 = vpop.f32.mrf.mxu0 }
  0xad   :  { %v152_v39 = vadd.f32 %v151_v25, %v80_v33 }
  0xaf   :  { %v167_v46 = vmax.f32 %v152_v39, 0.0  ;;  %v499_v39 = vld [vmem:[%s814_s2 + $0x70] sm:$0xff] }
  0xb4   :  { %v154_v27 = vpop.f32.mrf.mxu0 }
  0xb5   :  { %v155_v37 = vadd.f32 %v154_v27, %v85_v29  ;;  %v181_v27 = vpop.permute.xlu1 %180 }
  0xb7   :  { %v168_v43 = vmax.f32 %v155_v37, 0.0  ;;  %v497_v37 = vld [vmem:[%s814_s2 + $0x60] sm:$0xff] }
  0xbc   :  { %v157_v30 = vpop.f32.mrf.mxu0 }
  0xbd   :  { %v158_v35 = vadd.f32 %v157_v30, %v90_v32  ;;  %v316_v48 = vpop.permute.xlu1 %315 }
  0xbf   :  { %v169_v40 = vmax.f32 %v158_v35, 0.0  ;;  %v495_v35 = vld [vmem:[%s814_s2 + $0x50] sm:$0xff] }
  0xc4   :  { %v160_v34 = vpop.f32.mrf.mxu0 }
  0xc5   :  { %v161_v36 = vadd.f32 %v160_v34, %v95_v28  ;;  %v493_v34 = vld [vmem:[%s814_s2 + $0x40] sm:$0xff] }
  0xc7   :  { %v170_v38 = vmax.f32 %v161_v36, 0.0  ;;  %v496_v36 = vld [vmem:[%s814_s2 + $0x58] sm:$0xff] }
  0xc9   :  { %244 = vmatpush.msra.mxu1 %v170_v38  ;;  %v498_v38 = vld [vmem:[%s814_s2 + $0x68] sm:$0xff] }
  0xcb   :  { %245 = vmatpush.msra.mxu1 %v169_v40  ;;  %v500_v40 = vld [vmem:[%s814_s2 + $0x78] sm:$0xff]  ;;  %s593_s2 = smov [#allocation5]  }
  0xcc   :  { %s462_s0 = sshll.u32 %s593_s2, 4  ;;  %s463_s0 = int_to_ptr.vmem [resolvable:$true] %s462_s0 }
  0xcd   :  { %246 = vmatpush.msra.mxu1 %v168_v43 }
  0xcf   :  { %247 = vmatpush.msra.mxu1 %v167_v46 }
  0xd1   :  { %248 = vmatpush.msra.mxu1 %v166_v49 }
  0xd3   :  { %249 = vmatpush.msra.mxu1 %v165_v51  ;;  %v592_v51 = vmov 3  }
  0xd4   :  { %529 = vset.pattern.permute.xlu0 %v592_v51  ;;  %528 = vset.pattern.permute.xlu2 %v592_v51 }
  0xd5   :  { %250 = vmatpush.msra.mxu1 %v164_v52  ;;  %v320_v52 = vpop.permute.xlu0 %319  ;;  %405 = vperm.xlu0 %529, %v676_v11  }
  0xd6   :  { %410 = vperm.xlu2 %528, %v682_v12  }
  0xd7   :  { %251 = vmatpush.msra.mxu1 %v163_v53  ;;  %v308_v53 = vpop.permute.xlu1 %307 }
  0xd8   :  { %485 = vmatmul.msk.f32.vlgmr.msra.gmra.mxu1 %vm211_vm1, %v171_v54 }
  0xdf   :  { %v296_v11 = vpop.permute.xlu1 %295 }
  0xe0   :  { %486 = vmatmul.msk.f32.gmra.mxu1 %vm211_vm1, %v172_v55 }
  0xe8   :  { %487 = vmatmul.msk.f32.gmra.mxu1 %vm211_vm1, %v173_v56 }
  0xf0   :  { %488 = vmatmul.msk.f32.gmra.mxu1 %vm211_vm1, %v174_v57 }
  0xf8   :  { %489 = vmatmul.msk.f32.gmra.mxu1 %vm211_vm1, %v175_v58 }
 0x100   :  { %490 = vmatmul.msk.f32.gmra.mxu1 %vm211_vm1, %v176_v59 }
 0x108   :  { %491 = vmatmul.msk.f32.gmra.mxu1 %vm211_vm1, %v177_v60 }
 0x110   :  { %492 = vmatmul.msk.f32.gmra.mxu1 %vm211_vm1, %v178_v61  ;;  %v304_v61 = vpop.permute.xlu2 %303 }
 0x155   :  { %v253_v62 = vpop.f32.mrf.mxu1 }
 0x156   :  { %v254_v30 = vadd.f32 %v253_v62, %v181_v27 }
 0x158   :  { %v277_v33 = vmax.f32 %v254_v30, 0.0 }
 0x15d   :  { %v256_v63 = vpop.f32.mrf.mxu1 }
 0x15e   :  { %v257_v28 = vadd.f32 %v256_v63, %v185_v13 }
 0x160   :  { %v278_v32 = vmax.f32 %v257_v28, 0.0 }
 0x165   :  { %v259_v0 = vpop.f32.mrf.mxu1 }
 0x166   :  { %v260_v26 = vadd.f32 %v259_v0, %v189_v5  ;;  %v300_v0 = vpop.permute.xlu0 %299 }
 0x168   :  { %v279_v31 = vmax.f32 %v260_v26, 0.0 }
 0x16d   :  { %v262_v1 = vpop.f32.mrf.mxu1 }
 0x16e   :  { %v263_v24 = vadd.f32 %v262_v1, %v193_v18  ;;  %v406_v18 = vpop.permute.xlu0 %405 }
 0x170   :  { %v280_v29 = vmax.f32 %v263_v24, 0.0 }
 0x175   :  { %v265_v3 = vpop.f32.mrf.mxu1 }
 0x176   :  { %v266_v9 = vadd.f32 %v265_v3, %v197_v16  ;;  %v399_v16 = vld [vmem:[#allocation2] sm:$0xff] }
 0x178   :  { %v281_v8 = vmax.f32 %v266_v9, 0.0 }
 0x17d   :  { %v268_v4 = vpop.f32.mrf.mxu1 }
 0x17e   :  { %v269_v2 = vadd.f32 %v268_v4, %v201_v10 }
 0x180   :  { %v282_v25 = vmax.f32 %v269_v2, 0.0 }
 0x185   :  { %v271_v14 = vpop.f32.mrf.mxu1 }
 0x186   :  { %v272_v20 = vadd.f32 %v271_v14, %v205_v17  ;;  %v400_v17 = vld [vmem:[#allocation2 + $0x8] sm:$0xff] }
 0x188   :  { %v283_v23 = vmax.f32 %v272_v20, 0.0 }
 0x18d   :  { %v274_v19 = vpop.f32.mrf.mxu1 }
 0x18e   :  { %v275_v21 = vadd.f32 %v274_v19, %v209_v6 }
 0x190   :  { %v284_v22 = vmax.f32 %v275_v21, 0.0  ;;  %v411_v21 = vpop.permute.xlu2 %410 }
 0x192   :  { %358 = vmatpush.msra.mxu2 %v284_v22 }
 0x194   :  { %359 = vmatpush.msra.mxu2 %v283_v23 }
 0x196   :  { %360 = vmatpush.msra.mxu2 %v282_v25 }
 0x198   :  { %361 = vmatpush.msra.mxu2 %v281_v8 }
 0x19a   :  { %362 = vmatpush.msra.mxu2 %v280_v29 }
 0x19c   :  { %363 = vmatpush.msra.mxu2 %v279_v31 }
 0x19e   :  { %364 = vmatpush.msra.mxu2 %v278_v32 }
 0x1a0   :  { %365 = vmatpush.msra.mxu2 %v277_v33 }
 0x1a1   :  { %501 = vmatmul.msk.f32.vlgmr.msra.gmra.mxu2 %vm211_vm1, %v493_v34 }
 0x1a9   :  { %502 = vmatmul.msk.f32.gmra.mxu2 %vm211_vm1, %v494_v15 }
 0x1b1   :  { %503 = vmatmul.msk.f32.gmra.mxu2 %vm211_vm1, %v495_v35 }
 0x1b9   :  { %504 = vmatmul.msk.f32.gmra.mxu2 %vm211_vm1, %v496_v36 }
 0x1c1   :  { %505 = vmatmul.msk.f32.gmra.mxu2 %vm211_vm1, %v497_v37 }
 0x1c9   :  { %506 = vmatmul.msk.f32.gmra.mxu2 %vm211_vm1, %v498_v38 }
 0x1d1   :  { %507 = vmatmul.msk.f32.gmra.mxu2 %vm211_vm1, %v499_v39 }
 0x1d9   :  { %508 = vmatmul.msk.f32.gmra.mxu2 %vm211_vm1, %v500_v40 }
 0x224   :  { %v367_v41 = vpop.f32.mrf.mxu2 }
 0x225   :  { %v368_v6 = vadd.f32 %v367_v41, %v296_v11 }
 0x227   :  { %v391_v14 = vmax.f32 %v368_v6, 0.0 }
 0x22c   :  { %v370_v42 = vpop.f32.mrf.mxu2 }
 0x22d   :  { %v371_v4 = vadd.f32 %v370_v42, %v300_v0 }
 0x22f   :  { %v392_v10 = vmax.f32 %v371_v4, 0.0 }
 0x234   :  { %v373_v43 = vpop.f32.mrf.mxu2 }
 0x235   :  { %v374_v1 = vadd.f32 %v373_v43, %v304_v61 }
 0x237   :  { %v393_v7 = vmax.f32 %v374_v1, 0.0 }
 0x23c   :  { %v376_v44 = vpop.f32.mrf.mxu2 }
 0x23d   :  { %v377_v62 = vadd.f32 %v376_v44, %v308_v53 }
 0x23f   :  { %v394_v12 = vmax.f32 %v377_v62, 0.0 }
 0x244   :  { %v379_v45 = vpop.f32.mrf.mxu2 }
 0x245   :  { %v380_v59 = vadd.f32 %v379_v45, %v312_v50 }
 0x247   :  { %v395_v3 = vmax.f32 %v380_v59, 0.0 }
 0x24c   :  { %v382_v46 = vpop.f32.mrf.mxu2 }
 0x24d   :  { %v383_v57 = vadd.f32 %v382_v46, %v316_v48 }
 0x24f   :  { %v396_v63 = vmax.f32 %v383_v57, 0.0 }
 0x254   :  { %v385_v49 = vpop.f32.mrf.mxu2 }
 0x255   :  { %v386_v55 = vadd.f32 %v385_v49, %v320_v52 }
 0x257   :  { %v397_v60 = vmax.f32 %v386_v55, 0.0 }
 0x25c   :  { %v388_v54 = vpop.f32.mrf.mxu2 }
 0x25d   :  { %v389_v56 = vadd.f32 %v388_v54, %v324_v47 }
 0x25f   :  { %v398_v58 = vmax.f32 %v389_v56, 0.0 }
 0x261   :  { %427 = vmatpush.msra.mxu3 %v398_v58 }
 0x263   :  { %428 = vmatpush.msra.mxu3 %v397_v60 }
 0x265   :  { %429 = vmatpush.msra.mxu3 %v396_v63 }
 0x267   :  { %430 = vmatpush.msra.mxu3 %v395_v3 }
 0x269   :  { %431 = vmatpush.msra.mxu3 %v394_v12 }
 0x26b   :  { %432 = vmatpush.msra.mxu3 %v393_v7 }
 0x26d   :  { %433 = vmatpush.msra.mxu3 %v392_v10 }
 0x26f   :  { %434 = vmatpush.msra.mxu3 %v391_v14 }
 0x270   :  { %509 = vmatmul.msk.f32.vlgmr.msra.gmra.mxu3 %vm211_vm1, %v399_v16 }
 0x278   :  { %510 = vmatmul.msk.f32.gmra.mxu3 %vm211_vm1, %v400_v17 }
 0x2f3   :  { %v436_v19 = vpop.f32.mrf.mxu3 }
 0x2f4   :  { %v437_v20 = vadd.f32 %v436_v19, %v406_v18 }
 0x2f6   :  { %456 = vst [vmem:[#allocation5] sm:$0xff] %v437_v20 }
 0x2fb   :  { %v439_v2 = vpop.f32.mrf.mxu3 }
 0x2fc   :  { %v440_v22 = vadd.f32 %v439_v2, %v411_v21 }
 0x2fe   :  { %v443_v9 = vmin.f32 %v440_v22, 20.0  ;;  %vm442_vm3 = vcmp.gt.f32.partialorder %v440_v22, 20.0 }
 0x300   :  { %v444_v23 = vmul.f32 1.442695, %v443_v9 }
 0x302   :  { %530 = vpow2.f32 %v444_v23 }
 0x308   :  { %v531_v5 = vpop.eup %530 }
 0x309   :  { %v446_v24 = vadd.f32 1.0, %v531_v5  ;;  %v449_v25 = vmul.f32 -0.5, %v531_v5  ;;  %v452_v26 = vand.u32 2147483647, %v531_v5 }
 0x30b   :  { %532 = vlog2.f32 %v446_v24  ;;  %v450_v13 = vadd.f32 1.0, %v449_v25  ;;  %vm453_vm2 = vcmp.lt.f32.partialorder %v452_v26, 0.0004427343 }
 0x30d   :  { %v451_v28 = vmul.f32 %v531_v5, %v450_v13 }
 0x311   :  { %v533_v8 = vpop.eup %532 }
 0x312   :  { %v448_v27 = vmul.f32 0.6931472, %v533_v8 }
 0x314   :  { %v454_v29 = vsel %vm453_vm2, %v451_v28, %v448_v27 }
 0x315   :  { %v455_v30 = vsel %vm442_vm3, %v440_v22, %v454_v29 }
 0x316   :  { %457 = vst [vmem:[#allocation5 + $0x8] sm:$0xff] %v455_v30 }
 0x317   :  { %470 = dma.vmem_to_hbm [thread:$0]  %s463_s0, 256, %s465_s19, [#allocation4], %s587_s23, %s587_s23, %s588_s24  }
 0x318   :  { %584 = dma.done.wait [#allocation4], 256  }
 0x319   :  { %585 = vsyncadd [#allocation4], 4294967040 }
 0x31a   :  { %475 = vsyncpa [#allocation3], 1 }
 0x31b   :  { %476 = vsyncpa [#allocation4], 1 }

</bundles_post_ra>
